<compile_context>
chip_gen: v5e
topology: v5e:2x2
jax: 0.10.0
libtpu: 0.0.40
codegen_flags: <defaults>
</compile_context>

<pallas_src>
import math

import jax
import jax.numpy as jnp
from jax.experimental import pallas as pl
from jax.experimental.pallas import tpu as pltpu


def _layer_scale_kernel(x_ref, gamma_ref, o_ref):
    # x_ref:     (TILE_ROWS, W) block of the flattened, lane-dense input
    # gamma_ref: (1, W) gamma row, resident in VMEM across all grid steps (1 DMA total)
    # o_ref:     (TILE_ROWS, W)
    o_ref[...] = x_ref[...] * gamma_ref[...]


def _sublane_multiple(dtype) -> int:
    """Minimum second-to-last block multiple for the dtype's sublane packing."""
    itemsize = jnp.dtype(dtype).itemsize
    if itemsize >= 4:
        return 8      # f32 / i32
    if itemsize == 2:
        return 16     # bf16 / f16
    return 32         # int8 / fp8


def _vmem_budget_bytes() -> int:
    """~75% of this chip's per-core VMEM (leaves headroom for compiler scratch)."""
    try:
        cap = int(pltpu.get_tpu_info().vmem_capacity_bytes)
    except Exception:
        cap = 64 << 20  # assume the smallest (v7x) if the query is unavailable
    return max(int(cap * 0.75), 16 << 20)


def layer_scale(x: jax.Array, gamma: jax.Array, *,
                tile_bytes: int = 8 << 20, inplace: bool = False) -> jax.Array:
    """Computes x * gamma (LayerScale forward). x: (..., D), gamma: (D,)."""
    orig_shape = x.shape
    d = orig_shape[-1]
    assert gamma.shape == (d,), f"gamma shape {gamma.shape} != ({d},)"
    gamma = gamma.astype(x.dtype)

    itemsize = jnp.dtype(x.dtype).itemsize
    sub = _sublane_multiple(x.dtype)
    total = math.prod(orig_shape)
    trailing_pad = 0

    # --- choose a lane-dense last dim W (multiple of 128 AND of D so broadcast holds)
    if d % 128 == 0:
        w = d
        x2 = x.reshape(total // d, d)
        gamma_row = gamma.reshape(1, d)
    else:
        lcm = (d * 128) // math.gcd(d, 128)
        if total % lcm == 0:
            # Pack lcm/D consecutive tokens per 128-lane-aligned row; tiling gamma
            # keeps the per-element gamma index (flat index mod D) identical.
            w = lcm
            x2 = x.reshape(total // w, w)
            gamma_row = jnp.tile(gamma, w // d).reshape(1, w)
        elif total * itemsize >= (1 << 20):
            # Large tensor with awkward D: one pad pass to a lane-dense layout beats
            # streaming the whole array at masked vst.msk store rate.
            w = lcm
            padded_total = w * pl.cdiv(total, w)
            trailing_pad = padded_total - total
            x_flat = jnp.pad(x.reshape(-1), (0, trailing_pad))
            x2 = x_flat.reshape(padded_total // w, w)
            gamma_row = jnp.tile(gamma, w // d).reshape(1, w)
        else:
            # Small + awkward D: full-D last dim (block == full array dim is legal,
            # masked stores, exact semantics) — cheaper than extra copies at this size.
            w = d
            x2 = x.reshape(total // d, d)
            gamma_row = gamma.reshape(1, d)

    rows = x2.shape[0]
    gamma_bytes = w * itemsize

    # --- tile_rows: ~tile_bytes per buffer, capped so the double-buffered working set
    #     (2x in + 2x out tiles + gamma row + slack) fits the per-chip VMEM budget.
    vmem_budget = _vmem_budget_bytes()
    max_tile_bytes = max((vmem_budget - gamma_bytes - (2 << 20)) // 4, 1 << 20)
    tile_bytes = min(tile_bytes, max_tile_bytes)

    tile_rows = max(tile_bytes // (w * itemsize), 1)
    tile_rows = max((tile_rows // sub) * sub, sub)
    tile_rows = min(tile_rows, sub * pl.cdiv(rows, sub))
    # v7x has 2 TensorCores; guarantee >= 2 grid steps when there is enough work so the
    # "parallel" grid axis can shard across both (harmless elsewhere).
    if rows > 2 * sub:
        tile_rows = min(tile_rows, sub * pl.cdiv(pl.cdiv(rows, 2), sub))

    # --- cdiv grid, NO row padding: Pallas masks the ragged last block's writes; the
    #     corresponding tail reads are garbage but never used (pure elementwise op).
    grid = pl.cdiv(rows, tile_rows)

    tile_nbytes = tile_rows * w * itemsize
    vmem_limit = max(min(4 * tile_nbytes + gamma_bytes + (2 << 20), vmem_budget), 8 << 20)

    cost = pl.CostEstimate(
        flops=rows * w,
        transcendentals=0,
        bytes_accessed=2 * rows * w * itemsize + gamma_bytes,
    )

    out = pl.pallas_call(
        _layer_scale_kernel,
        out_shape=jax.ShapeDtypeStruct((rows, w), x.dtype),
        grid_spec=pltpu.PrefetchScalarGridSpec(
            num_scalar_prefetch=0,
            grid=(grid,),
            in_specs=[
                # TODO(synk): sweep pipeline_mode=pl.Buffered(3) on v7x once measured.
                pl.BlockSpec((tile_rows, w), lambda i: (i, 0)),
                pl.BlockSpec((1, w), lambda i: (0, 0)),   # gamma resident: 1 DMA total
            ],
            out_specs=pl.BlockSpec((tile_rows, w), lambda i: (i, 0)),
        ),
        compiler_params=pltpu.CompilerParams(
            dimension_semantics=("parallel",),
            vmem_limit_bytes=vmem_limit,
        ),
        cost_estimate=cost,
        input_output_aliases=({0: 0} if inplace else {}),
    )(x2, gamma_row)

    if trailing_pad:
        out = out.reshape(-1)[:total]
    return out.reshape(orig_shape)


if __name__ == "__main__":
    key = jax.random.PRNGKey(0)
    B, N, D = 2, 8, 32
    init_values = 1e-5

    # Deterministic parameter init, mirroring nn.Parameter(init_values * torch.ones(dim))
    gamma = jnp.full((D,), init_values, dtype=jnp.float32)
    x = jax.random.normal(key, (B, N, D), dtype=jnp.float32)

    y = jax.block_until_ready(layer_scale(x, gamma))
    y_ref = x * gamma
    assert y.shape == x.shape
    assert jnp.allclose(y, y_ref, rtol=1e-6, atol=1e-6)

    # Lane-dense path (D multiple of 128) with a ragged last row block.
    B2, N2, D2 = 3, 37, 256
    x_big = jax.random.normal(jax.random.PRNGKey(1), (B2, N2, D2), dtype=jnp.float32)
    g_big = jnp.full((D2,), init_values, dtype=jnp.float32)
    y_big = jax.block_until_ready(layer_scale(x_big, g_big))
    assert jnp.allclose(y_big, x_big * g_big, rtol=1e-6, atol=1e-6)

    # Awkward-D fallback (D not a multiple of 128, small tensor -> masked-store path).
    B3, N3, D3 = 2, 5, 48
    x_odd = jax.random.normal(jax.random.PRNGKey(2), (B3, N3, D3), dtype=jnp.float32)
    g_odd = jnp.full((D3,), init_values, dtype=jnp.float32)
    y_odd = jax.block_until_ready(layer_scale(x_odd, g_odd))
    assert jnp.allclose(y_odd, x_odd * g_odd, rtol=1e-6, atol=1e-6)

    print("KERNEL_OK")
</pallas_src>

<mosaic_0001>
module attributes {stable_mosaic.version = 11 : i64} {
  func.func @_layer_scale_kernel(%arg0: i32, %arg1: memref<8x128xf32, #tpu.memory_space<vmem>>, %arg2: memref<1x128xf32, #tpu.memory_space<vmem>>, %arg3: memref<8x128xf32, #tpu.memory_space<vmem>>) attributes {dimension_semantics = [#tpu.dimension_semantics<parallel>], iteration_bounds = array<i64: 1>, scalar_prefetch = 0 : i64, scratch_operands = 0 : i64, tpu.core_type = #tpu.core_type<tc>, window_params = [{transform_indices = @transform_0, window_bounds = array<i64: 8, 128>}, {pipeline_mode = #tpu.pipeline_mode<synchronous>, transform_indices = @transform_1, window_bounds = array<i64: 1, 128>}, {transform_indices = @transform_2, window_bounds = array<i64: 8, 128>}]} {
    %c0 = arith.constant 0 : index
    %c0_0 = arith.constant 0 : index
    %0 = vector.load %arg1[%c0, %c0_0] : memref<8x128xf32, #tpu.memory_space<vmem>>, vector<8x128xf32>
    %c0_1 = arith.constant 0 : index
    %c0_2 = arith.constant 0 : index
    %1 = vector.load %arg2[%c0_1, %c0_2] : memref<1x128xf32, #tpu.memory_space<vmem>>, vector<1x128xf32>
    %2 = vector.broadcast %1 : vector<1x128xf32> to vector<8x128xf32>
    %3 = arith.mulf %0, %2 : vector<8x128xf32>
    %c0_3 = arith.constant 0 : index
    %c0_4 = arith.constant 0 : index
    %4 = vector.load %arg3[%c0_3, %c0_4] : memref<8x128xf32, #tpu.memory_space<vmem>>, vector<8x128xf32>
    tpu.vector_store %arg3[%c0_3, %c0_4], %3 {strides = array<i32>} : memref<8x128xf32, #tpu.memory_space<vmem>>, vector<8x128xf32>,
    return
  }
  func.func @transform_0(%arg0: i32) -> (i32, i32) {
    %c0_i32 = arith.constant 0 : i32
    %c0_i32_0 = arith.constant 0 : i32
    return %arg0, %c0_i32 : i32, i32
  }
  func.func @transform_1(%arg0: i32) -> (i32, i32) {
    %c0_i32 = arith.constant 0 : i32
    %c0_i32_0 = arith.constant 0 : i32
    %c0_i32_1 = arith.constant 0 : i32
    return %c0_i32, %c0_i32_0 : i32, i32
  }
  func.func @transform_2(%arg0: i32) -> (i32, i32) {
    %c0_i32 = arith.constant 0 : i32
    %c0_i32_0 = arith.constant 0 : i32
    return %arg0, %c0_i32 : i32, i32
  }
}

</mosaic_0001>

<bundles_post_ra>
// kernel: tpu_custom_call.1
= control target key start
LH: loop header
LB: loop body
LE: loop exit
PB: predicated region body
PF: predicated region fallthrough
CT: control target
= control target key end

     0   :  { %7 = vsyncpa [#allocation3], 0  ;;  %s182_s0 = inlined_call_operand.hbm [shape: f32[4,128], index: 0, kind: input, shape index: {}]   ;;  %s183_s1 = inlined_call_operand.hbm [shape: f32[1,128], index: 1, kind: input, shape index: {}]   ;;  %s184_s2 = inlined_call_operand.hbm [shape: f32[4,128], index: 2, kind: output, shape index: {}]  }
   0x1   :  { %8 = vsyncpa [#allocation6], 0 }
   0x2   :  { %9 = vsyncpa [#allocation4], 0 }
   0x3   :  { %13 = vsyncadd [#allocation3], 64  ;;  %s14_s11 = sshll.u32 %s182_s0, 4  ;;  %s153_s12 = smov [#allocation2]   ;;  %s15_s11 = int_to_ptr.hbm [resolvable:$true] %s14_s11 }
   0x4   :  { %s16_s13 = sshll.u32 %s153_s12, 4  ;;  %s28_s16 = sshll.u32 %s183_s1, 4  ;;  %s17_s13 = int_to_ptr.vmem [resolvable:$true] %s16_s13  ;;  %s29_s16 = int_to_ptr.hbm [resolvable:$true] %s28_s16 }
   0x5   :  { %s154_s17 = smov 64   ;;  %s155_s18 = smov 4  }
   0x6   :  { %22 = dma.hbm_to_vmem [thread:$0]  %s15_s11, 64, %s17_s13, [#allocation3], %s154_s17, %s154_s17, %s155_s18  }
   0x7   :  { %s156_s19 = smov [#allocation5]  }
   0x8   :  { %s30_s20 = sshll.u32 %s156_s19, 4  ;;  %s31_s20 = int_to_ptr.vmem [resolvable:$true] %s30_s20 }
   0x9   :  { %33 = dma.hbm_to_vmem [thread:$0]  %s29_s16, 16, %s31_s20, [#allocation6]  }
   0xa   :  { %147 = dma.done.wait [#allocation3], 128  }
   0xb   :  { %148 = vsyncadd [#allocation3], 4294967168 }
   0xc   :  { %149 = dma.done.wait [#allocation6], 16  }
   0xd   :  { %150 = vsyncadd [#allocation6], 4294967280  ;;  %v42_v0 = vld [vmem:[#allocation2] sm:$0xff]  ;;  %v74_v1 = vld [vmem:[#allocation5] ss:$0 sm:$0xff] }
   0xe   :  { %v47_v2 = vmul.f32 %v74_v1, %v42_v0 }
  0x10   :  { %48 = vst [vmem:[#allocation7] sm:$0xff] %v47_v2 }
  0x11   :  { %52 = vsyncadd [#allocation4], 64  ;;  %s55_s1 = sshll.u32 %s184_s2, 4  ;;  %s157_s22 = smov [#allocation7]   ;;  %s56_s1 = int_to_ptr.hbm [resolvable:$true] %s55_s1 }
  0x12   :  { %s53_s23 = sshll.u32 %s157_s22, 4  ;;  %s54_s23 = int_to_ptr.vmem [resolvable:$true] %s53_s23 }
  0x13   :  { %61 = dma.vmem_to_hbm [thread:$0]  %s54_s23, 64, %s56_s1, [#allocation4], %s154_s17, %s154_s17, %s155_s18  }
  0x14   :  { %151 = dma.done.wait [#allocation4], 128  }
  0x15   :  { %152 = vsyncadd [#allocation4], 4294967168 }
  0x16   :  { %66 = vsyncpa [#allocation3], 1 }
  0x17   :  { %67 = vsyncpa [#allocation6], 1 }
  0x18   :  { %68 = vsyncpa [#allocation4], 1 }

</bundles_post_ra>
